<compile_context>
chip_gen: v7x
topology: tpu7x:2x2x1
jax: 0.10.0
libtpu: 0.0.40
codegen_flags: <defaults>
</compile_context>

<pallas_src>
import jax
import jax.numpy as jnp
from jax.experimental import pallas as pl
from jax.experimental.pallas import tpu as pltpu


def _seg_head_kernel(x_ref, wt_ref, b_ref, o_ref):
    """One (HW tile, batch element) grid step.

    x_ref : (1, C, tile_hw)  input slab, NCHW layout (C small, HW lane-dense)
    wt_ref: (K, C)           1x1 conv weight, pre-transposed
    b_ref : (K, 1)           bias (broadcast along HW lanes)
    o_ref : (K, tile_hw)     resident accumulator / final mean output
    """
    b = pl.program_id(1)
    nb = pl.num_programs(1)

    @pl.when(b == 0)
    def _():
        o_ref[...] = jnp.zeros_like(o_ref)

    x = x_ref[0]                                            # (C, tile_hw)
    y = jnp.dot(wt_ref[...], x,
                preferred_element_type=jnp.float32) + b_ref[...]
    o_ref[...] += jax.nn.sigmoid(y)                         # exp + recip on EUP

    @pl.when(b == nb - 1)
    def _():
        o_ref[...] = o_ref[...] * (1.0 / nb)                # finalize mean in place


def _pick_tile_hw(hw, max_tile=2048):
    """Largest lane-aligned tile (multiple of 128) that divides HW; else full HW."""
    if hw <= max_tile:
        return hw
    for t in range(max_tile, 127, -128):
        if hw % t == 0:
            return t
    return hw  # fallback: single (full) tile


def torchmodel_forward(x_nchw, weight, bias):
    """x_nchw: (B, C, H, W).  weight: (C, K).  bias: (K,).
    Returns (1, K, H, W), matching the torch module's output."""
    B, C, H, W = x_nchw.shape
    K = weight.shape[1]
    HW = H * W
    tile_hw = _pick_tile_hw(HW)
    n_hw = HW // tile_hw

    x_flat = x_nchw.reshape(B, C, HW)      # free view, stays NCHW
    wt = weight.T                          # (K, C) — tiny, one-time
    bias2d = bias.reshape(K, 1)

    out_khw = pl.pallas_call(
        _seg_head_kernel,
        out_shape=jax.ShapeDtypeStruct((K, HW), jnp.float32),
        grid_spec=pltpu.PrefetchScalarGridSpec(
            num_scalar_prefetch=0,
            grid=(n_hw, B),
            in_specs=[
                pl.BlockSpec((1, C, tile_hw), lambda h, b: (b, 0, h)),
                pl.BlockSpec((K, C), lambda h, b: (0, 0)),
                pl.BlockSpec((K, 1), lambda h, b: (0, 0)),
            ],
            out_specs=pl.BlockSpec((K, tile_hw), lambda h, b: (0, h)),
        ),
        compiler_params=pltpu.CompilerParams(
            dimension_semantics=("parallel", "arbitrary")),
    )(x_flat, wt, bias2d)

    # (K, HW) is already channel-major: just reshape to (1, K, H, W).
    return out_khw.reshape(1, K, H, W)


def _reference(x_nchw, weight, bias):
    """Pure-JAX reference reproducing the torch module exactly (incl. cat)."""
    x2 = jnp.concatenate([x_nchw, x_nchw], axis=0)                # (2B, C, H, W)
    y = jnp.einsum('bchw,ck->bkhw', x2, weight) + bias[None, :, None, None]
    s = jax.nn.sigmoid(y)
    return jnp.mean(s, axis=0, keepdims=True)                     # (1, K, H, W)


if __name__ == "__main__":
    B, C, H, W = 2, 4, 16, 16
    NUM_CLASSES = 8

    key = jax.random.PRNGKey(0)
    kx, kw, kb = jax.random.split(key, 3)
    x = jax.random.normal(kx, (B, C, H, W), dtype=jnp.float32)
    weight = jax.random.normal(kw, (C, NUM_CLASSES), dtype=jnp.float32) * 0.1
    bias = jax.random.normal(kb, (NUM_CLASSES,), dtype=jnp.float32) * 0.1

    out = jax.block_until_ready(torchmodel_forward(x, weight, bias))
    ref = _reference(x, weight, bias)

    assert out.shape == (1, NUM_CLASSES, H, W), out.shape
    assert jnp.allclose(out, ref, atol=1e-5, rtol=1e-5), (
        float(jnp.max(jnp.abs(out - ref))))
    print("KERNEL_OK")
</pallas_src>

<mosaic_0001>
module attributes {stable_mosaic.version = 11 : i64} {
  func.func @_seg_head_kernel(%arg0: i32, %arg1: i32, %arg2: memref<1x4x256xf32, #tpu.memory_space<vmem>>, %arg3: memref<8x4xf32, #tpu.memory_space<vmem>>, %arg4: memref<8x1xf32, #tpu.memory_space<vmem>>, %arg5: memref<8x256xf32, #tpu.memory_space<vmem>>) attributes {dimension_semantics = [#tpu.dimension_semantics<parallel>, #tpu.dimension_semantics<arbitrary>], iteration_bounds = array<i64: 1, 2>, scalar_prefetch = 0 : i64, scratch_operands = 0 : i64, tpu.core_type = #tpu.core_type<tc>, window_params = [{transform_indices = @transform_0, window_bounds = array<i64: 1, 4, 256>}, {pipeline_mode = #tpu.pipeline_mode<synchronous>, transform_indices = @transform_1, window_bounds = array<i64: 8, 4>}, {pipeline_mode = #tpu.pipeline_mode<synchronous>, transform_indices = @transform_2, window_bounds = array<i64: 8, 1>}, {transform_indices = @transform_3, window_bounds = array<i64: 8, 256>}]} {
    %c0_i32 = arith.constant 0 : i32
    %0 = arith.cmpi eq, %arg1, %c0_i32 : i32
    %1 = arith.extui %0 : i1 to i32
    %c0_i32_0 = arith.constant 0 : i32
    %2 = arith.cmpi ne, %1, %c0_i32_0 : i32
    scf.if %2 {
      %cst_13 = arith.constant 0.000000e+00 : f32
      %21 = vector.broadcast %cst_13 : f32 to vector<8x256xf32>
      %c0_14 = arith.constant 0 : index
      %c0_15 = arith.constant 0 : index
      %22 = vector.load %arg5[%c0_14, %c0_15] : memref<8x256xf32, #tpu.memory_space<vmem>>, vector<8x256xf32>
      tpu.vector_store %arg5[%c0_14, %c0_15], %21 {strides = array<i32>} : memref<8x256xf32, #tpu.memory_space<vmem>>, vector<8x256xf32>,
    } else {
    }
    %c0 = arith.constant 0 : index
    %c0_1 = arith.constant 0 : index
    %c0_2 = arith.constant 0 : index
    %3 = vector.load %arg2[%c0, %c0_1, %c0_2] : memref<1x4x256xf32, #tpu.memory_space<vmem>>, vector<1x4x256xf32>
    %4 = vector.shape_cast %3 : vector<1x4x256xf32> to vector<4x256xf32>
    %c0_3 = arith.constant 0 : index
    %c0_4 = arith.constant 0 : index
    %5 = vector.load %arg3[%c0_3, %c0_4] : memref<8x4xf32, #tpu.memory_space<vmem>>, vector<8x4xf32>
    %cst = arith.constant dense<0.000000e+00> : vector<8x256xf32>
    %6 = tpu.matmul %5, %4, %cst {dimension_numbers = #tpu.dot_dimension_numbers<[1], [0], [0], [1], [0, 0, 1, 1], [], []>} : vector<8x4xf32>, vector<4x256xf32>, vector<8x256xf32> -> vector<8x256xf32>
    %c0_5 = arith.constant 0 : index
    %c0_6 = arith.constant 0 : index
    %7 = vector.load %arg4[%c0_5, %c0_6] : memref<8x1xf32, #tpu.memory_space<vmem>>, vector<8x1xf32>
    %8 = vector.broadcast %7 : vector<8x1xf32> to vector<8x256xf32>
    %9 = arith.addf %6, %8 : vector<8x256xf32>
    %c0_7 = arith.constant 0 : index
    %c0_8 = arith.constant 0 : index
    %10 = vector.load %arg5[%c0_7, %c0_8] : memref<8x256xf32, #tpu.memory_space<vmem>>, vector<8x256xf32>
    %11 = arith.negf %9 : vector<8x256xf32>
    %12 = math.exp %11 : vector<8x256xf32>
    %cst_9 = arith.constant 1.000000e+00 : f32
    %13 = vector.broadcast %cst_9 : f32 to vector<8x256xf32>
    %14 = arith.addf %13, %12 : vector<8x256xf32>
    %15 = arith.divf %13, %14 : vector<8x256xf32>
    %16 = arith.addf %10, %15 : vector<8x256xf32>
    %c0_10 = arith.constant 0 : index
    %c0_11 = arith.constant 0 : index
    %17 = vector.load %arg5[%c0_10, %c0_11] : memref<8x256xf32, #tpu.memory_space<vmem>>, vector<8x256xf32>
    tpu.vector_store %arg5[%c0_10, %c0_11], %16 {strides = array<i32>} : memref<8x256xf32, #tpu.memory_space<vmem>>, vector<8x256xf32>,
    %c1_i32 = arith.constant 1 : i32
    %18 = arith.cmpi eq, %arg1, %c1_i32 : i32
    %19 = arith.extui %18 : i1 to i32
    %c0_i32_12 = arith.constant 0 : i32
    %20 = arith.cmpi ne, %19, %c0_i32_12 : i32
    scf.if %20 {
      %c0_13 = arith.constant 0 : index
      %c0_14 = arith.constant 0 : index
      %21 = vector.load %arg5[%c0_13, %c0_14] : memref<8x256xf32, #tpu.memory_space<vmem>>, vector<8x256xf32>
      %cst_15 = arith.constant 5.000000e-01 : f32
      %22 = vector.broadcast %cst_15 : f32 to vector<8x256xf32>
      %23 = arith.mulf %21, %22 : vector<8x256xf32>
      %c0_16 = arith.constant 0 : index
      %c0_17 = arith.constant 0 : index
      %24 = vector.load %arg5[%c0_16, %c0_17] : memref<8x256xf32, #tpu.memory_space<vmem>>, vector<8x256xf32>
      tpu.vector_store %arg5[%c0_16, %c0_17], %23 {strides = array<i32>} : memref<8x256xf32, #tpu.memory_space<vmem>>, vector<8x256xf32>,
    } else {
    }
    return
  }
  func.func @transform_0(%arg0: i32, %arg1: i32) -> (i32, i32, i32) {
    %c0_i32 = arith.constant 0 : i32
    %c0_i32_0 = arith.constant 0 : i32
    return %arg1, %c0_i32, %arg0 : i32, i32, i32
  }
  func.func @transform_1(%arg0: i32, %arg1: i32) -> (i32, i32) {
    %c0_i32 = arith.constant 0 : i32
    %c0_i32_0 = arith.constant 0 : i32
    %c0_i32_1 = arith.constant 0 : i32
    return %c0_i32, %c0_i32_0 : i32, i32
  }
  func.func @transform_2(%arg0: i32, %arg1: i32) -> (i32, i32) {
    %c0_i32 = arith.constant 0 : i32
    %c0_i32_0 = arith.constant 0 : i32
    %c0_i32_1 = arith.constant 0 : i32
    return %c0_i32, %c0_i32_0 : i32, i32
  }
  func.func @transform_3(%arg0: i32, %arg1: i32) -> (i32, i32) {
    %c0_i32 = arith.constant 0 : i32
    %c0_i32_0 = arith.constant 0 : i32
    return %c0_i32, %arg0 : i32, i32
  }
}

</mosaic_0001>

<bundles_post_ra>
// kernel: tpu_custom_call.1
= control target key start
LH: loop header
LB: loop body
LE: loop exit
PB: predicated region body
PF: predicated region fallthrough
CT: control target
= control target key end

     0   :  { %8 = vsyncpa [#allocation3], 0  ;;  %s521_s12 = smov 0   ;;  %s523_s13 = smov 0   ;;  %s592_s0 = inlined_call_operand.vmem [shape: f32[2,4,256], index: 0, kind: input, shape index: {}]   ;;  %s593_s1 = inlined_call_operand.vmem [shape: f32[8,4], index: 1, kind: input, shape index: {}]   ;;  %s594_s2 = inlined_call_operand.vmem [shape: f32[8,1], index: 2, kind: input, shape index: {}]   ;;  %s595_s3 = inlined_call_operand.hbm [shape: f32[8,256], index: 3, kind: output, shape index: {}]  }
   0x1   :  { %s525_s14 = smov 0  }
   0x2 LB: > { %s381_s15 = sadd.s32 4294967295, %s495_s14   ;;  %s23_s16 = sadd.s32 1, %s491_s13  ;;  %s495_s14 = sphi %s525_s14, %s14_s14   ;;  %s491_s13 = sphi %s523_s13, %s598_s13   ;;  %s487_s12 = sphi %s521_s12, %s597_s12  }
   0x3   : > { %p24_p0 = scmp.ge.s32.totalorder %s23_s16, 2  ;;  %p384_p1 = scmp.ge.s32.totalorder %s495_s14, 1 }
   0x4   : > { %p157_p2 = scmp.lt.s32.totalorder %s495_s14, 3 }
   0x5   : > { %s600_s16 = smov (%p24_p0, %s23_s16), 0 }
   0x6   : > { %p158_p3 = pnand %p384_p1, %p157_p2 }
   0x7   : > { %p181_p4 = scmp.lt.s32.totalorder (!%p158_p3), %s487_s12, 1  ;;  %p387_p5 = scmp.ne.s32.totalorder (!%p158_p3), %s487_s12, 0 }
   0x8   : > { %161 = sbr.rel (%p158_p3) target bundleno = 307 (0x133), region = 32 }
   0xf   : > { %s182_s17 = scalar_select %p181_p4, %s487_s12, 1 }
  0x10   : > { %194 = sbr.rel (%p387_p5) target bundleno = 23 (0x17), region = 36  ;;  %v497_v0 = vmov (!%p387_p5), 0.0  }
  0x11   : > { %s398_s18 = sshll.u32 %s182_s17, 3  ;;  %195 = vst [vmem:[#allocation2] sm:$0xff] (!%p387_p5), %v497_v0  ;;  %196 = vst [vmem:[#allocation2 + $0x8] sm:$0xff] (!%p387_p5), %v497_v0 }
  0x12   : > { %s188_s21 = scalar_lea.vmem %s592_s0, %s398_s18 }
  0x17 PF: > { %v197_v1 = vld [vmem:[%s188_s21] sm:$0xff]  ;;  %vm211_vm0 = vcmask 1043456   ;;  %v498_v3 = vmov 0.0   ;;  %v499_v4 = vmov 0   ;;  %vm207_vm1 = vcmask 31744   ;;  %p393_p6 = scmp.ne.s32.totalorder %s487_s12, 1 }
  0x18   : > { %v206_v2 = vcombine.high %v197_v1, %v197_v1  ;;  %280 = vmatprep.mubr.f32.mxu0 %v498_v3  ;;  %433 = vset.pattern.permute.xlu0 %v499_v4  ;;  %v199_v5 = vld [vmem:[%s594_s2] sm:$0xff]  ;;  %v288_v19 = vld [vmem:[#allocation2 + $0x8] sm:$0xff] }
  0x19   : > { %v198_v6 = vld [vmem:[%s593_s1] sm:$0xff]  ;;  %202 = vperm.xlu0 %433, %v199_v5  }
  0x1a   : > { %388 = vmatprep.subr.msk.mxu0 %vm211_vm0, %v206_v2  ;;  %v287_v18 = vld [vmem:[#allocation2] sm:$0xff] }
  0x1b   : > { %389 = vmatpush1.msk.msra.mxu0 %vm211_vm0, %v197_v1 }
  0x1c   : > { %390 = vmatmul.mubr.msk.f32.vlgmr.msra.gmra.mrb[0].mxu0 %vm207_vm1, %v198_v6 }
  0x98   : > { %v203_v7 = vpop.permute.xlu0 %202 }
  0xef   : > { %v282_v8 = vpop.f32.mrb[0].mxu0 }
  0xf0   : > { %v283_v9 = vadd.f32 %v282_v8, %v203_v7  ;;  %v284_v10 = vpop.f32.mrb[1].mxu0 }
  0xf1   : > { %v285_v11 = vadd.f32 %v284_v10, %v203_v7 }
  0xf2   : > { %v391_v12 = vmul.f32 -1.442695, %v283_v9 }
  0xf3   : > { %v392_v13 = vmul.f32 -1.442695, %v285_v11 }
  0xf4   : > { %435 = vpow2.f32 %v391_v12 }
  0xf5   : > { %437 = vpow2.f32 %v392_v13 }
  0xfe   : > { %v436_v14 = vpop.eup %435 }
  0xff   : > { %v438_v15 = vpop.eup %437  ;;  %v295_v16 = vadd.f32 1.0, %v436_v14 }
 0x100   : > { %v296_v17 = vadd.f32 1.0, %v438_v15 }
 0x101   : > { %439 = vrcp.f32 %v295_v16 }
 0x102   : > { %441 = vrcp.f32 %v296_v17 }
 0x109   : > { %308 = sbr.rel (%p393_p6) target bundleno = 282 (0x11a), region = 40 }
 0x10b   : > { %v440_v20 = vpop.eup %439 }
 0x10c   : > { %v442_v21 = vpop.eup %441  ;;  %v301_v22 = vadd.f32 %v440_v20, %v287_v18 }
 0x10d   : > { %v302_v23 = vadd.f32 %v442_v21, %v288_v19 }
 0x10e   : > { %303 = vst [vmem:[#allocation2] sm:$0xff] %v301_v22 }
 0x10f   : > { %304 = vst [vmem:[#allocation2 + $0x8] sm:$0xff] %v302_v23 }
 0x115   : > { %v309_v24 = vld [vmem:[#allocation2] sm:$0xff] }
 0x116   : > { %v310_v25 = vld [vmem:[#allocation2 + $0x8] sm:$0xff]  ;;  %v311_v26 = vmul.f32 0.5, %v309_v24 }
 0x117   : > { %v312_v27 = vmul.f32 0.5, %v310_v25 }
 0x118   : > { %313 = vst [vmem:[#allocation2] sm:$0xff] %v311_v26 }
 0x119   : > { %314 = vst [vmem:[#allocation2 + $0x8] sm:$0xff] %v312_v27 }
 0x11a PF: > { %p557_p7 = scmp.eq.s32.totalorder %s381_s15, 1  ;;  %s500_s27 = smov [#allocation2]  }
 0x11b   : > { %s325_s28 = sshll.u32 %s500_s27, 4  ;;  %s326_s28 = int_to_ptr.vmem [resolvable:$true] %s325_s28 }
 0x11c   : > { %s443_s29 = scalar_lea.vmem %s326_s28, 256  ;;  %p450_p11 = scmp.lt.s32.totalorder %s326_s28, %s326_s28 }
 0x11d   : > { %p444_p8 = scmp.ne.s32.totalorder %s326_s28, %s443_s29  ;;  %p451_p12 = scmp.lt.s32.totalorder %s443_s29, %s443_s29 }
 0x11f   : > { %p445_p9 = pnand %p444_p8, %p557_p7  ;;  %p452_p13 = por %p451_p12, %p450_p11 }
 0x121   : > { %p446_p10 = pneg %p445_p9 }
 0x123   : > { %p453_p0 = pnand %p452_p13, %p446_p10 }
 0x125   : > { %456 = shalt.err (!%p453_p0)
}
 0x126   : > { %s457_s5 = scalar_lea.hbm %s595_s3, 256 }
 0x127   : > { %p458_p1 = scmp.ne.s32.totalorder %s595_s3, %s457_s5  ;;  %p463_p4 = scmp.lt.u32.totalorder %s457_s5, %s595_s3 }
 0x129   : > { %p459_p2 = pnand %p458_p1, %p557_p7 }
 0x12b   : > { %p460_p3 = pneg %p459_p2 }
 0x12d   : > { %p465_p5 = pnand %p463_p4, %p460_p3 }
 0x12f   : > { %468 = shalt.err (!%p465_p5)
}
 0x130   : > { %400 = dma.vmem_to_hbm [thread:$0]  (%p557_p7), %s326_s28, 256, %s595_s3, [#allocation3]  }
 0x131   : > { %482 = dma.done.wait (%p557_p7), [#allocation3], 256  }
 0x132   : > { %484 = vsyncadd (%p557_p7), [#allocation3], 4294967040 }
 0x133 PF: > { %s14_s14 = sadd.s32 1, %s495_s14   ;;  %s597_s12 = smov %s491_s13 }
 0x134   : > { %p11_p6 = scmp.ge.s32.totalorder %s14_s14, 4   ;;  %s598_s13 = smov %s600_s16 }
 0x136   :  { %13 = sbr.rel (!%p11_p6) target bundleno = 2 (0x2), region = 68 }
 0x13d   :  { %338 = vsyncpa [#allocation3], 1 }
 0x13e   :  { %340 = vsyncpa [#allocation3 + $0x1], 1 }

</bundles_post_ra>
